<compile_context>
chip_gen: v7x
topology: tpu7x:2x2x1
jax: 0.10.0
libtpu: 0.0.40
codegen_flags: <defaults>
</compile_context>

<pallas_src>
import functools

import jax
import jax.numpy as jnp
from jax.experimental import pallas as pl
from jax.experimental.pallas import tpu as pltpu


def _ssd_manage_kernel(x_ref, max_out_ref, sum_out_ref, *, cls_id, threshold):
    """One (batch, prior-tile) grid step.

    x_ref:       (1, C, TN) block of the transposed confidences.
    max_out_ref: (1, 1, TN) lane-wise running max of obj_scores (per batch).
    sum_out_ref: (1, 1, TN) lane-wise running sum of relu(conf-thr)^2 (per batch).
    """
    n = pl.program_id(1)

    x = x_ref[0].astype(jnp.float32)                       # (C, TN)
    c, tn = x.shape

    # Class-index mask (sublane iota) — avoids unaligned sublane slices.
    cls_idx = jax.lax.broadcasted_iota(jnp.int32, (c, tn), 0)
    zeros = jnp.zeros_like(x)

    # obj_scores: sum over classes 1..C-1 (exclude background class 0).
    obj = jnp.sum(jnp.where(cls_idx >= 1, x, zeros), axis=0, keepdims=True)       # (1, TN)
    # Confidence of the target class.
    cls_conf = jnp.sum(jnp.where(cls_idx == cls_id, x, zeros), axis=0,
                       keepdims=True)                                             # (1, TN)
    pen = jnp.maximum(cls_conf - threshold, 0.0)
    pen = pen * pen                                                               # (1, TN)

    @pl.when(n == 0)
    def _init():
        max_out_ref[0] = jnp.full((1, tn), -jnp.inf, jnp.float32)
        sum_out_ref[0] = jnp.zeros((1, tn), jnp.float32)

    # Lane-wise accumulation only; the cross-lane collapse is deferred to the
    # wrapper (done once per batch on a tiny (B, TN) array).
    max_out_ref[0] = jnp.maximum(max_out_ref[0], obj)
    sum_out_ref[0] = sum_out_ref[0] + pen


def _choose_block_n(n, block_n):
    if block_n is not None:
        assert n % block_n == 0, "block_n must divide the number of priors"
        assert block_n == n or block_n % 128 == 0, "block_n must be 128-aligned"
        return block_n
    if n % 128 != 0:
        return n  # single full-width tile: lane dim equals the full array dim
    tn = min(n, 1024)
    while n % tn:
        tn -= 128
    return tn


def ssd_feature_output_manage(ssd_output, loss_type, *, cls_id, threshold=0.3,
                              block_n=None):
    """JAX/Pallas equivalent of ssd_feature_output_manage.forward."""
    conf_normal, _conf_not_normal, _loc = ssd_output  # latter two unused, as in the reference
    assert conf_normal.ndim == 3
    b, n, c = conf_normal.shape

    # Put the long (priors) axis on lanes; the result is transpose-plumbing only.
    x = jnp.transpose(conf_normal, (0, 2, 1)).astype(jnp.float32)   # (B, C, N)

    tn = _choose_block_n(n, block_n)
    grid = (b, n // tn)

    kernel = functools.partial(_ssd_manage_kernel, cls_id=int(cls_id),
                               threshold=float(threshold))

    max_part, sum_part = pl.pallas_call(
        kernel,
        out_shape=(jax.ShapeDtypeStruct((b, 1, tn), jnp.float32),
                   jax.ShapeDtypeStruct((b, 1, tn), jnp.float32)),
        grid_spec=pltpu.PrefetchScalarGridSpec(
            num_scalar_prefetch=0,
            grid=grid,
            in_specs=[pl.BlockSpec((1, c, tn), lambda bi, ni: (bi, 0, ni))],
            out_specs=(pl.BlockSpec((1, 1, tn), lambda bi, ni: (bi, 0, 0)),
                       pl.BlockSpec((1, 1, tn), lambda bi, ni: (bi, 0, 0)))),
        compiler_params=pltpu.CompilerParams(
            dimension_semantics=("parallel", "arbitrary")),
    )(x)

    # Final cross-lane collapse (once, on tiny (B, TN) partials).
    max_conf = jnp.max(max_part[:, 0, :], axis=-1)            # (B,)
    thresholded_conf = jnp.sum(sum_part[:, 0, :], axis=-1)    # (B,)

    if loss_type == 'max_approach':
        # TODO(synk): reference does a host-side print(max_conf); debug print skipped.
        return max_conf
    elif loss_type == 'threshold_approach':
        # TODO(synk): reference prints the unbatched tensor stack; debug print skipped.
        return thresholded_conf
    else:
        raise ValueError(f"unknown loss_type: {loss_type!r}")


def _reference(conf_normal, loss_type, cls_id, threshold=0.3):
    conf_normal = conf_normal.astype(jnp.float32)
    obj_scores = jnp.sum(conf_normal[:, :, 1:], axis=2)
    confs = conf_normal[:, :, cls_id]
    if loss_type == 'max_approach':
        return jnp.max(obj_scores, axis=1)
    pen = jnp.maximum(confs - threshold, 0.0) ** 2
    return jnp.sum(pen, axis=1)


if __name__ == "__main__":
    key = jax.random.PRNGKey(0)
    B, N, C = 2, 1024, 21       # batch, priors, classes (incl. background)
    CLS_ID = 15                  # "person" class

    k1, k2, k3 = jax.random.split(key, 3)
    conf_normal = jax.random.uniform(k1, (B, N, C), dtype=jnp.float32)
    conf_not_normal = jax.random.uniform(k2, (B, N, C), dtype=jnp.float32)  # unused by forward
    loc = jax.random.uniform(k3, (B, N, 4), dtype=jnp.float32)              # unused by forward
    ssd_output = (conf_normal, conf_not_normal, loc)

    # block_n=256 -> 4 accumulation steps along the priors axis (exercises the
    # accumulator path while keeping lane-aligned tiles).
    max_conf = ssd_feature_output_manage(ssd_output, 'max_approach',
                                         cls_id=CLS_ID, block_n=256)
    thr_conf = ssd_feature_output_manage(ssd_output, 'threshold_approach',
                                         cls_id=CLS_ID, block_n=256)
    jax.block_until_ready((max_conf, thr_conf))

    ref_max = _reference(conf_normal, 'max_approach', CLS_ID)
    ref_thr = _reference(conf_normal, 'threshold_approach', CLS_ID)

    assert jnp.allclose(max_conf, ref_max, rtol=1e-5, atol=1e-5), (max_conf, ref_max)
    assert jnp.allclose(thr_conf, ref_thr, rtol=1e-5, atol=1e-5), (thr_conf, ref_thr)

    print("KERNEL_OK")
</pallas_src>

<mosaic_0001>
module attributes {stable_mosaic.version = 11 : i64} {
  func.func @_ssd_manage_kernel(%arg0: i32, %arg1: i32, %arg2: memref<1x21x256xf32, #tpu.memory_space<vmem>>, %arg3: memref<1x1x256xf32, #tpu.memory_space<vmem>>, %arg4: memref<1x1x256xf32, #tpu.memory_space<vmem>>) attributes {dimension_semantics = [#tpu.dimension_semantics<parallel>, #tpu.dimension_semantics<arbitrary>], iteration_bounds = array<i64: 2, 4>, scalar_prefetch = 0 : i64, scratch_operands = 0 : i64, tpu.core_type = #tpu.core_type<tc>, window_params = [{transform_indices = @transform_0, window_bounds = array<i64: 1, 21, 256>}, {transform_indices = @transform_1, window_bounds = array<i64: 1, 1, 256>}, {transform_indices = @transform_2, window_bounds = array<i64: 1, 1, 256>}]} {
    %c0 = arith.constant 0 : index
    %c0_0 = arith.constant 0 : index
    %c0_1 = arith.constant 0 : index
    %0 = vector.load %arg2[%c0, %c0_0, %c0_1] : memref<1x21x256xf32, #tpu.memory_space<vmem>>, vector<1x21x256xf32>
    %1 = vector.shape_cast %0 : vector<1x21x256xf32> to vector<21x256xf32>
    %2 = tpu.iota {dimensions = array<i32: 0>} : vector<21x256xi32>
    %cst = arith.constant 0.000000e+00 : f32
    %3 = vector.broadcast %cst : f32 to vector<21x256xf32>
    %c1_i32 = arith.constant 1 : i32
    %4 = vector.broadcast %c1_i32 : i32 to vector<21x256xi32>
    %5 = arith.cmpi sge, %2, %4 : vector<21x256xi32>
    %6 = arith.select %5, %1, %3 : vector<21x256xi1>, vector<21x256xf32>
    %cst_2 = arith.constant dense<0.000000e+00> : vector<256xf32>
    %7 = vector.multi_reduction <add>, %6, %cst_2 [0] : vector<21x256xf32> to vector<256xf32>
    %8 = vector.shape_cast %7 : vector<256xf32> to vector<1x256xf32>
    %c15_i32 = arith.constant 15 : i32
    %9 = vector.broadcast %c15_i32 : i32 to vector<21x256xi32>
    %10 = arith.cmpi eq, %2, %9 : vector<21x256xi32>
    %11 = arith.select %10, %1, %3 : vector<21x256xi1>, vector<21x256xf32>
    %cst_3 = arith.constant dense<0.000000e+00> : vector<256xf32>
    %12 = vector.multi_reduction <add>, %11, %cst_3 [0] : vector<21x256xf32> to vector<256xf32>
    %13 = vector.shape_cast %12 : vector<256xf32> to vector<1x256xf32>
    %cst_4 = arith.constant 3.000000e-01 : f32
    %14 = vector.broadcast %cst_4 : f32 to vector<1x256xf32>
    %15 = arith.subf %13, %14 : vector<1x256xf32>
    %cst_5 = arith.constant 0.000000e+00 : f32
    %16 = vector.broadcast %cst_5 : f32 to vector<1x256xf32>
    %17 = arith.maximumf %15, %16 : vector<1x256xf32>
    %18 = arith.mulf %17, %17 : vector<1x256xf32>
    %c0_i32 = arith.constant 0 : i32
    %19 = arith.cmpi eq, %arg1, %c0_i32 : i32
    %20 = arith.extui %19 : i1 to i32
    %c0_i32_6 = arith.constant 0 : i32
    %21 = arith.cmpi ne, %20, %c0_i32_6 : i32
    scf.if %21 {
      %cst_19 = arith.constant 0xFF800000 : f32
      %34 = vector.broadcast %cst_19 : f32 to vector<1x256xf32>
      %c0_20 = arith.constant 0 : index
      %c0_21 = arith.constant 0 : index
      %c0_22 = arith.constant 0 : index
      %35 = vector.load %arg3[%c0_20, %c0_21, %c0_22] : memref<1x1x256xf32, #tpu.memory_space<vmem>>, vector<1x1x256xf32>
      %36 = vector.shape_cast %35 : vector<1x1x256xf32> to vector<1x256xf32>
      %37 = vector.shape_cast %34 : vector<1x256xf32> to vector<1x1x256xf32>
      tpu.vector_store %arg3[%c0_20, %c0_21, %c0_22], %37 {strides = array<i32>} : memref<1x1x256xf32, #tpu.memory_space<vmem>>, vector<1x1x256xf32>,
      %cst_23 = arith.constant 0.000000e+00 : f32
      %38 = vector.broadcast %cst_23 : f32 to vector<1x256xf32>
      %c0_24 = arith.constant 0 : index
      %c0_25 = arith.constant 0 : index
      %c0_26 = arith.constant 0 : index
      %39 = vector.load %arg4[%c0_24, %c0_25, %c0_26] : memref<1x1x256xf32, #tpu.memory_space<vmem>>, vector<1x1x256xf32>
      %40 = vector.shape_cast %39 : vector<1x1x256xf32> to vector<1x256xf32>
      %41 = vector.shape_cast %38 : vector<1x256xf32> to vector<1x1x256xf32>
      tpu.vector_store %arg4[%c0_24, %c0_25, %c0_26], %41 {strides = array<i32>} : memref<1x1x256xf32, #tpu.memory_space<vmem>>, vector<1x1x256xf32>,
    } else {
    }
    %c0_7 = arith.constant 0 : index
    %c0_8 = arith.constant 0 : index
    %c0_9 = arith.constant 0 : index
    %22 = vector.load %arg3[%c0_7, %c0_8, %c0_9] : memref<1x1x256xf32, #tpu.memory_space<vmem>>, vector<1x1x256xf32>
    %23 = vector.shape_cast %22 : vector<1x1x256xf32> to vector<1x256xf32>
    %24 = arith.maximumf %23, %8 : vector<1x256xf32>
    %c0_10 = arith.constant 0 : index
    %c0_11 = arith.constant 0 : index
    %c0_12 = arith.constant 0 : index
    %25 = vector.load %arg3[%c0_10, %c0_11, %c0_12] : memref<1x1x256xf32, #tpu.memory_space<vmem>>, vector<1x1x256xf32>
    %26 = vector.shape_cast %25 : vector<1x1x256xf32> to vector<1x256xf32>
    %27 = vector.shape_cast %24 : vector<1x256xf32> to vector<1x1x256xf32>
    tpu.vector_store %arg3[%c0_10, %c0_11, %c0_12], %27 {strides = array<i32>} : memref<1x1x256xf32, #tpu.memory_space<vmem>>, vector<1x1x256xf32>,
    %c0_13 = arith.constant 0 : index
    %c0_14 = arith.constant 0 : index
    %c0_15 = arith.constant 0 : index
    %28 = vector.load %arg4[%c0_13, %c0_14, %c0_15] : memref<1x1x256xf32, #tpu.memory_space<vmem>>, vector<1x1x256xf32>
    %29 = vector.shape_cast %28 : vector<1x1x256xf32> to vector<1x256xf32>
    %30 = arith.addf %29, %18 : vector<1x256xf32>
    %c0_16 = arith.constant 0 : index
    %c0_17 = arith.constant 0 : index
    %c0_18 = arith.constant 0 : index
    %31 = vector.load %arg4[%c0_16, %c0_17, %c0_18] : memref<1x1x256xf32, #tpu.memory_space<vmem>>, vector<1x1x256xf32>
    %32 = vector.shape_cast %31 : vector<1x1x256xf32> to vector<1x256xf32>
    %33 = vector.shape_cast %30 : vector<1x256xf32> to vector<1x1x256xf32>
    tpu.vector_store %arg4[%c0_16, %c0_17, %c0_18], %33 {strides = array<i32>} : memref<1x1x256xf32, #tpu.memory_space<vmem>>, vector<1x1x256xf32>,
    return
  }
  func.func @transform_0(%arg0: i32, %arg1: i32) -> (i32, i32, i32) {
    %c0_i32 = arith.constant 0 : i32
    %c0_i32_0 = arith.constant 0 : i32
    return %arg0, %c0_i32, %arg1 : i32, i32, i32
  }
  func.func @transform_1(%arg0: i32, %arg1: i32) -> (i32, i32, i32) {
    %c0_i32 = arith.constant 0 : i32
    %c0_i32_0 = arith.constant 0 : i32
    %c0_i32_1 = arith.constant 0 : i32
    return %arg0, %c0_i32, %c0_i32_0 : i32, i32, i32
  }
  func.func @transform_2(%arg0: i32, %arg1: i32) -> (i32, i32, i32) {
    %c0_i32 = arith.constant 0 : i32
    %c0_i32_0 = arith.constant 0 : i32
    %c0_i32_1 = arith.constant 0 : i32
    return %arg0, %c0_i32, %c0_i32_0 : i32, i32, i32
  }
}

</mosaic_0001>

<bundles_post_ra>
// kernel: tpu_custom_call.1
= control target key start
LH: loop header
LB: loop body
LE: loop exit
PB: predicated region body
PF: predicated region fallthrough
CT: control target
= control target key end

     0   :  { %8 = vsyncpa [#allocation4], 0  ;;  %s980_s0 = inlined_call_operand.vmem [shape: f32[2,21,1024], index: 0, kind: input, shape index: {}]   ;;  %s981_s1 = inlined_call_operand.hbm [shape: f32[2,1,256], index: 1, kind: output, shape index: {0}]   ;;  %s982_s2 = inlined_call_operand.hbm [shape: f32[2,1,256], index: 2, kind: output, shape index: {1}]  }
   0x1   :  { %10 = vsyncpa [#allocation4 + $0x1], 0 }
   0x2   :  { %11 = vsyncpa [#allocation6], 0 }
   0x3   :  { %13 = vsyncpa [#allocation6 + $0x1], 0  ;;  %s756_s9 = smov 0   ;;  %s758_s10 = smov 0  }
   0x4   :  { %s760_s11 = smov 0   ;;  %s762_s12 = smov 0  }
   0x5   :  { %s764_s13 = smov 0   ;;  %s766_s14 = smov 0  }
   0x6   :  { %s768_s15 = smov 0   ;;  %s770_s16 = smov 0  }
   0x7   :  { %s772_s17 = smov 0   ;;  %s774_s18 = smov 0  }
   0x8 LB: > { %s472_s19 = sadd.s32 4294967295, %s734_s18   ;;  %s473_s20 = sadd.s32 4294967294, %s734_s18   ;;  %s734_s18 = sphi %s774_s18, %s19_s18   ;;  %s730_s17 = sphi %s772_s17, %s994_s17   ;;  %s726_s16 = sphi %s770_s16, %s993_s16   ;;  %s722_s15 = sphi %s768_s15, %s992_s15   ;;  %s718_s14 = sphi %s766_s14, %s991_s14   ;;  %s714_s13 = sphi %s764_s13, %s990_s13   ;;  %s710_s12 = sphi %s762_s12, %s989_s12   ;;  %s706_s11 = sphi %s760_s11, %s988_s11   ;;  %s702_s10 = sphi %s758_s10, %s987_s10   ;;  %s698_s9 = sphi %s756_s9, %s986_s9  }
   0x9   : > { %s28_s21 = sadd.s32 1, %s726_s16  ;;  %s31_s22 = sadd.s32 1, %s730_s17 }
   0xa   : > { %p29_p0 = scmp.ge.s32.totalorder %s28_s21, 4  ;;  %s40_s23 = sadd.s32 1, %s714_s13 }
   0xb   : > { %p47_p1 = scmp.ne.s32.totalorder %s714_s13, %s710_s12  ;;  %p48_p2 = scmp.eq.s32.totalorder %s734_s18, 0 }
   0xc   : > { %s996_s21 = smov (%p29_p0, %s28_s21), 0  ;;  %s998_s22 = smov (!%p29_p0, %s31_s22), %s730_s17 }
   0xd   : > { %s36_s24 = ssub.s32 %s726_s16, %s996_s21  ;;  %p819_p3 = por %p48_p2, %p47_p1 }
   0xe   : > { %p33_p4 = scmp.ge.s32.totalorder %s998_s22, 2  ;;  %s66_s26 = sadd.s32 1, %s706_s11 }
   0xf   : > { %p76_p5 = scmp.ne.s32.totalorder %s706_s11, %s702_s10  ;;  %p77_p6 = scmp.eq.s32.totalorder %s472_s19, 7 }
  0x10   : > { %s1000_s22 = smov (%p33_p4, %s998_s22), 0  ;;  %p82_p8 = scmp.ne.s32.totalorder %s702_s10, %s698_s9 }
  0x11   : > { %p828_p7 = por %p77_p6, %p76_p5  ;;  %s35_s28 = ssub.s32 %s730_s17, %s1000_s22 }
  0x12   : > { %p83_p9 = scmp.eq.s32.totalorder %s473_s20, 7  ;;  %s37_s29 = sor.u32 %s36_s24, %s35_s28 }
  0x13   : > { %p64_p10 = scmp.eq.s32.totalorder %s35_s28, 0  ;;  %p38_p11 = scmp.eq.s32.totalorder %s37_s29, 0 }
  0x14   : > { %p836_p12 = por %p83_p9, %p82_p8  ;;  %p475_p13 = scmp.ge.s32.totalorder %s734_s18, 8 }
  0x15   : > { %s841_s3 = scalar_select %p64_p10, %s706_s11, %s66_s26  }
  0x16   : > { %s844_s4 = scalar_select %p38_p11, %s714_s13, %s40_s23  }
  0x17   : > { %125 = sbr.rel (%p475_p13) target bundleno = 41 (0x29), region = 16 }
  0x1e   : > { %128 = sbr.rel (!%p819_p3) target bundleno = 41 (0x29), region = 20  ;;  %s130_s5 = sand.u32 (%p819_p3), 1, %s714_s13  }
  0x1f   : > { %s494_s6 = smul.u32 (%p819_p3), 48, %s130_s5  ;;  %s476_s7 = sshll.u32 (%p819_p3), %s726_s16, 1 }
  0x20   : > { %s495_s8 = smul.u32 (%p819_p3), 24, %s730_s17 }
  0x21   : > { %s132_s28 = scalar_lea.vmem (%p819_p3), [#allocation2], %s494_s6 }
  0x22   : > { %s135_s19 = sadd.s32 (%p819_p3), %s495_s8, %s476_s7 }
  0x23   : > { %s477_s20 = sshll.u32 (%p819_p3), %s135_s19, 3 }
  0x24   : > { %s137_s23 = scalar_lea.vmem (%p819_p3), %s980_s0, %s477_s20 }
  0x25   : > { %v150_v0 = vld [vmem:[%s137_s23] sm:$0xff]  ;;  %v152_v1 = vld [vmem:[%s137_s23 + $0x8] sm:$0xff] }
  0x26   : > { %v154_v2 = vld [vmem:[%s137_s23 + $0x40] sm:$0xff]  ;;  %151 = vst [vmem:[%s132_s28] sm:$0xff] %v150_v0  ;;  %153 = vst [vmem:[%s132_s28 + $0x8] sm:$0xff] %v152_v1  ;;  %v156_v3 = vld [vmem:[%s137_s23 + $0x48] sm:$0xff] }
  0x27   : > { %155 = vst [vmem:[%s132_s28 + $0x10] sm:$0xff] %v154_v2  ;;  %v158_v4 = vld [vmem:[%s137_s23 + $0x80] sm:$0xff]  ;;  %v160_v5 = vld [vmem:[%s137_s23 + $0x88] sm:$0xff]  ;;  %157 = vst [vmem:[%s132_s28 + $0x18] sm:$0xff] %v156_v3 }
  0x28   : > { %159 = vst [vmem:[%s132_s28 + $0x20] sm:$0xff] %v158_v4  ;;  %161 = vst [vmem:[%s132_s28 + $0x28] sm:$0xff] %v160_v5 }
  0x29 PF: > { %p478_p0 = scmp.ge.s32.totalorder %s734_s18, 1  ;;  %p166_p1 = scmp.lt.s32.totalorder %s734_s18, 9 }
  0x2b   : > { %p167_p2 = pnand %p478_p0, %p166_p1 }
  0x2c   : > { %s173_s25 = sand.u32 (!%p167_p2), 1, %s710_s12   ;;  %s859_s29 = sand.u32 (!%p167_p2), 1, %s702_s10   ;;  %v206_v6 = vlaneseq (!%p167_p2)  ;;  %vm220_vm0 = vcmask (!%p167_p2), 1044480  }
  0x2d   : > { %170 = sbr.rel (%p167_p2) target bundleno = 121 (0x79), region = 43  ;;  %s479_s6 = sshll.u32 (!%p167_p2), %s859_s29, 1 }
  0x2e   : > { %s496_s5 = smul.u32 (!%p167_p2), 48, %s173_s25  ;;  %v863_v7 = vshrl.u32 (!%p167_p2), %v206_v6, 7  ;;  %s869_s12 = scalar_lea.vmem (!%p167_p2), [#allocation3], %s479_s6 }
  0x2f   : > { %s873_s8 = scalar_lea.vmem (!%p167_p2), [#allocation5], %s479_s6  ;;  %p483_p3 = scmp.ne.s32.totalorder (!%p167_p2), %s718_s14, 0 }
  0x30   : > { %s175_s7 = scalar_lea.vmem (!%p167_p2), [#allocation2], %s496_s5  ;;  %v208_v11 = vadd.s32 (!%p167_p2), 8, %v863_v7  ;;  %vm210_vm1 = vcmp.ge.s32.totalorder (!%p167_p2), %v863_v7, 1 }
  0x31   : > { %v200_v8 = vld [vmem:[%s175_s7] sm:$0xff] (!%p167_p2)  ;;  %v201_v9 = vld [vmem:[%s175_s7 + $0x8] sm:$0xff] (!%p167_p2)  ;;  %v202_v10 = vld [vmem:[%s175_s7 + $0x10] sm:$0xff] (!%p167_p2) }
  0x32   : > { %v203_v12 = vld [vmem:[%s175_s7 + $0x18] sm:$0xff] (!%p167_p2)  ;;  %v204_v13 = vld [vmem:[%s175_s7 + $0x20] sm:$0x1f] (!%p167_p2)  ;;  %v205_v14 = vld [vmem:[%s175_s7 + $0x28] sm:$0x1f] (!%p167_p2)  ;;  %v213_v15 = vsel (!%p167_p2), %vm210_vm1, %v200_v8, 0.0 }
  0x33   : > { %v214_v16 = vsel (!%p167_p2), %vm210_vm1, %v201_v9, 0.0  ;;  %v219_v17 = vadd.f32 (!%p167_p2), %v213_v15, %v202_v10  ;;  %v221_v18 = vsel (!%p167_p2), %vm220_vm0, %v204_v13, 0.0  ;;  %v230_v19 = vsel (!%p167_p2), %vm220_vm0, %v205_v14, 0.0 }
  0x34   : > { %v229_v20 = vadd.f32 %v214_v16, %v203_v12  ;;  %vm239_vm2 = vcmp.eq.s32.totalorder %v208_v11, 15  ;;  %vm277_vm3 = vcmp.lt.s32.totalorder (!%p483_p3), %v206_v6, 256  ;;  %v736_v55 = vmov (!%p483_p3), -inf  }
  0x35   : > { %v222_v21 = vadd.f32 %v221_v18, %v219_v17  ;;  %v243_v22 = vsel %vm239_vm2, %v202_v10, 0.0  ;;  %v244_v23 = vsel %vm239_vm2, %v203_v12, 0.0  ;;  %279 = vst.msk [vmem:[%s869_s12] sm:$0x3] (!%p483_p3), %vm277_vm3, %v736_v55  ;;  %v737_v56 = vmov (!%p483_p3), 0.0  }
  0x36   : > { %v231_v24 = vadd.f32 %v230_v19, %v229_v20  ;;  %v250_v25 = vrot.slane %v243_v22, 4  ;;  %v259_v26 = vrot.slane %v244_v23, 4  ;;  %280 = vst.msk [vmem:[%s873_s8] sm:$0x3] (!%p483_p3), %vm277_vm3, %v737_v56 }
  0x37   : > { %v223_v27 = vrot.slane %v222_v21, 4 }
  0x38   : > { %v232_v28 = vrot.slane %v231_v24, 4  ;;  %v251_v29 = vadd.f32 %v250_v25, %v243_v22  ;;  %v260_v30 = vadd.f32 %v259_v26, %v244_v23 }
  0x39   : > { %v224_v31 = vadd.f32 %v223_v27, %v222_v21 }
  0x3a   : > { %v233_v32 = vadd.f32 %v232_v28, %v231_v24  ;;  %v252_v33 = vrot.slane %v251_v29, 2  ;;  %v261_v34 = vrot.slane %v260_v30, 2 }
  0x3b   : > { %v225_v35 = vrot.slane %v224_v31, 2 }
  0x3c   : > { %v234_v36 = vrot.slane %v233_v32, 2  ;;  %v253_v37 = vadd.f32 %v252_v33, %v251_v29  ;;  %v262_v38 = vadd.f32 %v261_v34, %v260_v30 }
  0x3d   : > { %v226_v39 = vadd.f32 %v225_v35, %v224_v31 }
  0x3e   : > { %v235_v40 = vadd.f32 %v234_v36, %v233_v32  ;;  %v254_v41 = vrot.slane %v253_v37, 1  ;;  %v263_v42 = vrot.slane %v262_v38, 1 }
  0x3f   : > { %v227_v43 = vrot.slane %v226_v39, 1 }
  0x40   : > { %v236_v44 = vrot.slane %v235_v40, 1  ;;  %v255_v45 = vadd.f32 %v254_v41, %v253_v37  ;;  %v264_v46 = vadd.f32 %v263_v42, %v262_v38  ;;  %274 = sbr.rel (%p483_p3) target bundleno = 71 (0x47), region = 51 }
  0x41   : > { %v228_v47 = vadd.f32 %v227_v43, %v226_v39 }
  0x42   : > { %v237_v48 = vadd.f32 %v236_v44, %v235_v40  ;;  %v481_v49 = vadd.f32 -0.3, %v255_v45  ;;  %v482_v50 = vadd.f32 -0.3, %v264_v46 }
  0x44   : > { %v267_v51 = vmax.f32 %v481_v49, 0.0  ;;  %v268_v52 = vmax.f32 %v482_v50, 0.0 }
  0x46   : > { %v269_v53 = vmul.f32 %v267_v51, %v267_v51  ;;  %v270_v54 = vmul.f32 %v268_v52, %v268_v52 }
  0x47 PF: > { %v738_v57 = vmov 1966171168   ;;  %v284_v59 = vcombine.low %v228_v47, %v237_v48  ;;  %s492_s14 = sshll.u32 %s722_s15, 5  ;;  %v281_v1 = vld [vmem:[%s869_s12] sm:$0x3]  ;;  %s347_s19 = sshll.u32 %s869_s12, 4  ;;  %s891_s19 = int_to_ptr.vmem [resolvable:$true] %s347_s19 }
  0x48   : > { %v286_v58 = vunpack.c.l.s4 %v738_v57  ;;  %v309_v61 = vcombine.low %v269_v53, %v270_v54  ;;  %v306_v2 = vld [vmem:[%s873_s8] sm:$0x3]  ;;  %s361_s20 = sshll.u32 %s873_s8, 4  ;;  %vm303_vm4 = vcmp.lt.s32.totalorder %v206_v6, 256  ;;  %s889_s23 = scalar_lea.hbm %s981_s1, %s492_s14  ;;  %s898_s20 = int_to_ptr.vmem [resolvable:$true] %s361_s20 }
  0x49   : > { %s896_s25 = scalar_lea.hbm %s982_s2, %s492_s14  ;;  %s328_s5 = scalar_lea.sflag [#allocation4], %s859_s29 }
  0x4a   : > { %v287_v60 = vunpack.c.0.s8 %v286_v58  ;;  %s592_s6 = scalar_lea.vmem %s891_s19, 32  ;;  %s739_s7 = smov [#allocation3]  }
  0x4b   : > { %p593_p4 = scmp.ne.s32.totalorder %s891_s19, %s592_s6  ;;  %s596_s24 = sshll.u32 %s739_s7, 4  ;;  %s597_s24 = int_to_ptr.vmem [resolvable:$false] %s596_s24 }
  0x4c   : > { %v290_v62 = vsub.s32 %v287_v60, %v863_v7  ;;  %s598_s26 = scalar_lea.vmem %s597_s24, 64  ;;  %p599_p8 = scmp.lt.s32.totalorder %s891_s19, %s597_s24 }
  0x4d   : > { %p594_p5 = pnand %p593_p4, %p828_p7  ;;  %p600_p9 = scmp.lt.s32.totalorder %s598_s26, %s592_s6 }
  0x4e   : > { %v291_v63 = vrot.slane %v284_v59, %v290_v62  ;;  %v316_v0 = vrot.slane %v309_v61, %v290_v62 }
  0x4f   : > { %p595_p6 = pneg %p594_p5  ;;  %p601_p10 = por %p600_p9, %p599_p8 }
  0x50   : > { %v298_v3 = vrot.slane %v291_v63, %v290_v62  ;;  %v323_v4 = vrot.slane %v316_v0, %v290_v62 }
  0x51   : > { %p602_p11 = pnand %p601_p10, %p595_p6 }
  0x52   : > { %v300_v5 = vmax.f32 %v281_v1, %v298_v3  ;;  %v325_v7 = vadd.f32 %v323_v4, %v306_v2 }
  0x54   : > { %305 = vst.msk [vmem:[%s869_s12] sm:$0x3] %vm303_vm4, %v300_v5  ;;  %326 = vst.msk [vmem:[%s873_s8] sm:$0x3] %vm303_vm4, %v325_v7 }
  0x55   : > { %605 = shalt.err (!%p602_p11)
}
  0x56   : > { %s606_s12 = scalar_lea.hbm %s889_s23, 32  ;;  %s610_s15 = scalar_lea.hbm %s981_s1, 64 }
  0x57   : > { %p607_p13 = scmp.ne.s32.totalorder %s889_s23, %s606_s12  ;;  %p611_p2 = scmp.lt.u32.totalorder %s889_s23, %s981_s1 }
  0x58   : > { %p612_p3 = scmp.lt.u32.totalorder %s610_s15, %s606_s12  ;;  %p614_p5 = scmp.lt.u32.totalorder %s606_s12, %s889_s23 }
  0x59   : > { %p608_p0 = pnand %p607_p13, %p828_p7 }
  0x5a   : > { %p613_p4 = por %p612_p3, %p611_p2 }
  0x5b   : > { %p609_p1 = pneg %p608_p0 }
  0x5c   : > { %p615_p6 = por %p614_p5, %p613_p4 }
  0x5e   : > { %p616_p8 = pnand %p615_p6, %p609_p1 }
  0x60   : > { %619 = shalt.err (!%p616_p8)
}
  0x61   : > { %497 = dma.vmem_to_hbm [thread:$0]  (%p828_p7), %s891_s19, 32, %s889_s23, %s328_s5  }
  0x62   : > { %s333_s6 = scalar_lea.sflag [#allocation6], %s859_s29  ;;  %s620_s24 = scalar_lea.vmem %s898_s20, 32 }
  0x63   : > { %p621_p9 = scmp.ne.s32.totalorder %s898_s20, %s620_s24  ;;  %s740_s26 = smov [#allocation5]  }
  0x64   : > { %s624_s12 = sshll.u32 %s740_s26, 4  ;;  %s625_s12 = int_to_ptr.vmem [resolvable:$false] %s624_s12 }
  0x65   : > { %p622_p10 = pnand %p621_p9, %p828_p7  ;;  %s626_s8 = scalar_lea.vmem %s625_s12, 64 }
  0x66   : > { %p627_p13 = scmp.lt.s32.totalorder %s898_s20, %s625_s12  ;;  %p628_p0 = scmp.lt.s32.totalorder %s626_s8, %s620_s24 }
  0x67   : > { %p623_p11 = pneg %p622_p10 }
  0x68   : > { %p629_p1 = por %p628_p0, %p627_p13 }
  0x6a   : > { %p630_p2 = pnand %p629_p1, %p623_p11 }
  0x6c   : > { %633 = shalt.err (!%p630_p2)
}
  0x6d   : > { %s634_s29 = scalar_lea.hbm %s896_s25, 32  ;;  %s638_s5 = scalar_lea.hbm %s982_s2, 64 }
  0x6e   : > { %p635_p3 = scmp.ne.s32.totalorder %s896_s25, %s634_s29  ;;  %p639_p6 = scmp.lt.u32.totalorder %s896_s25, %s982_s2 }
  0x6f   : > { %p640_p8 = scmp.lt.u32.totalorder %s638_s5, %s634_s29  ;;  %p642_p10 = scmp.lt.u32.totalorder %s634_s29, %s896_s25 }
  0x70   : > { %p636_p4 = pnand %p635_p3, %p828_p7 }
  0x71   : > { %p641_p9 = por %p640_p8, %p639_p6 }
  0x72   : > { %p637_p5 = pneg %p636_p4 }
  0x73   : > { %p643_p11 = por %p642_p10, %p641_p9 }
  0x75   : > { %p644_p13 = pnand %p643_p11, %p637_p5 }
  0x77   : > { %647 = shalt.err (!%p644_p13)
}
  0x78   : > { %498 = dma.vmem_to_hbm [thread:$0]  (%p828_p7), %s898_s20, 32, %s896_s25, %s333_s6  }
  0x79 PF: > { %p508_p0 = scmp.ge.s32.totalorder %s734_s18, 2  ;;  %s373_s28 = sand.u32 1, %s698_s9  }
  0x7a   : > { %s374_s7 = scalar_lea.sflag [#allocation4], %s373_s28 }
  0x7b   : > { %p502_p1 = pnand %p508_p0, %p836_p12 }
  0x7d   : > { %689 = dma.done.wait (!%p502_p1), %s374_s7, 32  }
  0x7e   : > { %691 = vsyncadd (!%p502_p1), %s374_s7, 4294967264  ;;  %s383_s24 = scalar_lea.sflag [#allocation6], %s373_s28 }
  0x7f   : > { %693 = dma.done.wait (!%p502_p1), %s383_s24, 32  }
  0x80   : > { %695 = vsyncadd (!%p502_p1), %s383_s24, 4294967264  ;;  %s19_s18 = sadd.s32 1, %s734_s18   ;;  %s986_s9 = smov %s702_s10 }
  0x81   : > { %p16_p2 = scmp.ge.s32.totalorder %s19_s18, 10   ;;  %s987_s10 = smov %s706_s11 }
  0x82   : > { %s988_s11 = smov %s841_s3  ;;  %s989_s12 = smov %s714_s13 }
  0x83   : > { %s990_s13 = smov %s844_s4  ;;  %s991_s14 = smov %s726_s16 }
  0x84   : > { %s992_s15 = smov %s730_s17  ;;  %s993_s16 = smov %s996_s21 }
  0x85   : > { %s994_s17 = smov %s1000_s22  ;;  %18 = sbr.rel (!%p16_p2) target bundleno = 8 (0x8), region = 108 }
  0x8c   :  { %388 = vsyncpa [#allocation4], 1 }
  0x8d   :  { %390 = vsyncpa [#allocation4 + $0x1], 1 }
  0x8e   :  { %391 = vsyncpa [#allocation6], 1 }
  0x8f   :  { %393 = vsyncpa [#allocation6 + $0x1], 1 }

</bundles_post_ra>
